<compile_context>
chip_gen: v5e
topology: v5e:2x2
jax: 0.10.0
libtpu: 0.0.40
codegen_flags: <defaults>
</compile_context>

<pallas_src>
import jax
import jax.numpy as jnp
from jax.experimental import pallas as pl
from jax.experimental.pallas import tpu as pltpu


def residual_kernel(x_ref, w_ref, b_ref, g_ref, o_ref):
    """One (C, T_HW) tile: channels on sublanes, spatial (H*W) on lanes.

    x_ref: (1, C, T)  input tile, native dtype
    w_ref: (C, C)     1x1-conv weight, [c_out, c_in], f32 (pre-cast)
    b_ref: (C, 1)     bias, f32 (pre-cast)
    g_ref: (1,)       gamma scalar in SMEM
    o_ref: (1, C, T)  output tile
    """
    x = x_ref[0]                       # (C, T) — lane-dense
    w = w_ref[...]                     # (C, C), f32
    C = x.shape[0]

    # 1x1 conv over the tiny channel dim as unrolled VPU broadcast-MACs:
    #   acc[c_out, l] = sum_ci w[c_out, ci] * x[ci, l]
    # Stays lane-dense on H*W; no MXU, no transpose, f32 accumulation.
    acc = w[:, 0:1] * x[0:1, :]
    for ci in range(1, C):
        acc = acc + w[:, ci:ci + 1] * x[ci:ci + 1, :]
    acc = acc + b_ref[...]             # (C, 1) bias broadcast over lanes

    gamma = g_ref[0]
    o_ref[0] = (x + gamma * acc).astype(o_ref.dtype)


def residual_forward(x_nchw, w_out_in, bias, gamma, *, t_hw=1024):
    """x_nchw: (N, C, H, W); w_out_in: (C, C); bias: (C,); gamma: (1,)."""
    N, C, H, W = x_nchw.shape
    HW = H * W

    # Pure reshape (no transpose, no extra HBM pass): spatial goes on lanes.
    x3 = x_nchw.reshape(N, C, HW)

    # Lane tile: multiple of 128, capped at t_hw; pad H*W so the tile divides.
    t = min(t_hw, ((HW + 127) // 128) * 128)
    t = max(t, 128)
    hw_p = ((HW + t - 1) // t) * t
    if hw_p != HW:
        x3 = jnp.pad(x3, ((0, 0), (0, 0), (0, hw_p - HW)))

    # Pre-cast parameters once in the wrapper (no per-iteration casts in-kernel).
    w32 = w_out_in.astype(jnp.float32)
    b32 = bias.astype(jnp.float32).reshape(C, 1)
    g32 = gamma.astype(jnp.float32).reshape(1)

    # VMEM budget: double-buffered in/out tiles + resident params + headroom;
    # well under the v7x 64 MiB physical / default scoped budgets.
    tile_bytes = C * t * x3.dtype.itemsize
    vmem_limit = int(min(48 * 1024 * 1024,
                         max(16 * 1024 * 1024, 8 * tile_bytes + (1 << 20))))

    out3 = pl.pallas_call(
        residual_kernel,
        out_shape=jax.ShapeDtypeStruct((N, C, hw_p), x3.dtype),
        grid_spec=pltpu.PrefetchScalarGridSpec(
            num_scalar_prefetch=0,
            grid=(N, hw_p // t),
            in_specs=[
                pl.BlockSpec((1, C, t), lambda n, j: (n, 0, j)),    # x tile
                pl.BlockSpec((C, C), lambda n, j: (0, 0)),          # weight
                pl.BlockSpec((C, 1), lambda n, j: (0, 0)),          # bias
                pl.BlockSpec(memory_space=pltpu.MemorySpace.SMEM),  # gamma
            ],
            out_specs=pl.BlockSpec((1, C, t), lambda n, j: (n, 0, j)),
        ),
        compiler_params=pltpu.CompilerParams(
            dimension_semantics=("parallel", "parallel"),
            vmem_limit_bytes=vmem_limit),
    )(x3, w32, b32, g32)

    if hw_p != HW:
        out3 = out3[:, :, :HW]
    return out3.reshape(N, C, H, W)


if __name__ == "__main__":
    key = jax.random.PRNGKey(0)
    kx, kw, kb = jax.random.split(key, 3)

    N, C, H, W = 2, 4, 16, 16
    x = jax.random.normal(kx, (N, C, H, W), dtype=jnp.float32)

    # Inner 1x1-conv parameters (deterministic synthetic init).
    # PyTorch conv weight is (C_out, C_in, 1, 1); stored here as (C_out, C_in).
    w_out_in = jax.random.normal(kw, (C, C), dtype=jnp.float32) * 0.1
    bias = jax.random.normal(kb, (C,), dtype=jnp.float32) * 0.1

    # Module init is gamma = zeros(1); use a NONZERO gamma here so the fused
    # conv+bias path is actually exercised by the correctness check.
    gamma = jnp.array([0.7], dtype=jnp.float32)

    out = residual_forward(x, w_out_in, bias, gamma)
    out = jax.block_until_ready(out)

    # Reference: y = x + gamma * (conv1x1(x) + b), in plain JAX (no transposes).
    x3 = x.reshape(N, C, H * W)
    inner = jnp.einsum('oi,nil->nol', w_out_in, x3,
                       precision=jax.lax.Precision.HIGHEST) + bias[None, :, None]
    ref = (x3 + gamma[0] * inner).reshape(N, C, H, W)

    assert out.shape == x.shape and out.dtype == x.dtype
    assert jnp.allclose(out, ref, atol=1e-5, rtol=1e-5)

    # Also check the module-default gamma = 0 case (y == x exactly).
    out0 = jax.block_until_ready(
        residual_forward(x, w_out_in, bias, jnp.zeros((1,), jnp.float32)))
    assert jnp.allclose(out0, x, atol=1e-6, rtol=1e-6)

    print("KERNEL_OK")
</pallas_src>

<mosaic_0001>
module attributes {stable_mosaic.version = 11 : i64} {
  func.func @residual_kernel(%arg0: i32, %arg1: i32, %arg2: memref<1x4x256xf32, #tpu.memory_space<vmem>>, %arg3: memref<4x4xf32, #tpu.memory_space<vmem>>, %arg4: memref<4x1xf32, #tpu.memory_space<vmem>>, %arg5: memref<1xf32, #tpu.memory_space<smem>>, %arg6: memref<1x4x256xf32, #tpu.memory_space<vmem>>) attributes {dimension_semantics = [#tpu.dimension_semantics<parallel>, #tpu.dimension_semantics<parallel>], iteration_bounds = array<i64: 2, 1>, scalar_prefetch = 0 : i64, scratch_operands = 0 : i64, tpu.core_type = #tpu.core_type<tc>, window_params = [{transform_indices = @transform_0, window_bounds = array<i64: 1, 4, 256>}, {pipeline_mode = #tpu.pipeline_mode<synchronous>, transform_indices = @transform_1, window_bounds = array<i64: 4, 4>}, {pipeline_mode = #tpu.pipeline_mode<synchronous>, transform_indices = @transform_2, window_bounds = array<i64: 4, 1>}, {transform_indices = @transform_3, window_bounds = array<i64: 1>}, {transform_indices = @transform_4, window_bounds = array<i64: 1, 4, 256>}]} {
    %c0 = arith.constant 0 : index
    %c0_0 = arith.constant 0 : index
    %c0_1 = arith.constant 0 : index
    %0 = vector.load %arg2[%c0, %c0_0, %c0_1] : memref<1x4x256xf32, #tpu.memory_space<vmem>>, vector<1x4x256xf32>
    %1 = vector.shape_cast %0 : vector<1x4x256xf32> to vector<4x256xf32>
    %c0_2 = arith.constant 0 : index
    %c0_3 = arith.constant 0 : index
    %2 = vector.load %arg3[%c0_2, %c0_3] : memref<4x4xf32, #tpu.memory_space<vmem>>, vector<4x4xf32>
    %3 = vector.extract_strided_slice %2 {offsets = [0, 0], sizes = [4, 1], strides = [1, 1]} : vector<4x4xf32> to vector<4x1xf32>
    %4 = vector.extract_strided_slice %1 {offsets = [0, 0], sizes = [1, 256], strides = [1, 1]} : vector<4x256xf32> to vector<1x256xf32>
    %5 = vector.broadcast %3 : vector<4x1xf32> to vector<4x256xf32>
    %6 = vector.broadcast %4 : vector<1x256xf32> to vector<4x256xf32>
    %7 = arith.mulf %5, %6 : vector<4x256xf32>
    %8 = vector.extract_strided_slice %2 {offsets = [0, 1], sizes = [4, 1], strides = [1, 1]} : vector<4x4xf32> to vector<4x1xf32>
    %9 = vector.extract_strided_slice %1 {offsets = [1, 0], sizes = [1, 256], strides = [1, 1]} : vector<4x256xf32> to vector<1x256xf32>
    %10 = vector.broadcast %8 : vector<4x1xf32> to vector<4x256xf32>
    %11 = vector.broadcast %9 : vector<1x256xf32> to vector<4x256xf32>
    %12 = arith.mulf %10, %11 : vector<4x256xf32>
    %13 = arith.addf %7, %12 : vector<4x256xf32>
    %14 = vector.extract_strided_slice %2 {offsets = [0, 2], sizes = [4, 1], strides = [1, 1]} : vector<4x4xf32> to vector<4x1xf32>
    %15 = vector.extract_strided_slice %1 {offsets = [2, 0], sizes = [1, 256], strides = [1, 1]} : vector<4x256xf32> to vector<1x256xf32>
    %16 = vector.broadcast %14 : vector<4x1xf32> to vector<4x256xf32>
    %17 = vector.broadcast %15 : vector<1x256xf32> to vector<4x256xf32>
    %18 = arith.mulf %16, %17 : vector<4x256xf32>
    %19 = arith.addf %13, %18 : vector<4x256xf32>
    %20 = vector.extract_strided_slice %2 {offsets = [0, 3], sizes = [4, 1], strides = [1, 1]} : vector<4x4xf32> to vector<4x1xf32>
    %21 = vector.extract_strided_slice %1 {offsets = [3, 0], sizes = [1, 256], strides = [1, 1]} : vector<4x256xf32> to vector<1x256xf32>
    %22 = vector.broadcast %20 : vector<4x1xf32> to vector<4x256xf32>
    %23 = vector.broadcast %21 : vector<1x256xf32> to vector<4x256xf32>
    %24 = arith.mulf %22, %23 : vector<4x256xf32>
    %25 = arith.addf %19, %24 : vector<4x256xf32>
    %c0_4 = arith.constant 0 : index
    %c0_5 = arith.constant 0 : index
    %26 = vector.load %arg4[%c0_4, %c0_5] : memref<4x1xf32, #tpu.memory_space<vmem>>, vector<4x1xf32>
    %27 = vector.broadcast %26 : vector<4x1xf32> to vector<4x256xf32>
    %28 = arith.addf %25, %27 : vector<4x256xf32>
    %c0_6 = arith.constant 0 : index
    %29 = memref.load %arg5[%c0_6] : memref<1xf32, #tpu.memory_space<smem>>
    %30 = vector.broadcast %29 : f32 to vector<4x256xf32>
    %31 = arith.mulf %30, %28 : vector<4x256xf32>
    %32 = arith.addf %1, %31 : vector<4x256xf32>
    %c0_7 = arith.constant 0 : index
    %c0_8 = arith.constant 0 : index
    %c0_9 = arith.constant 0 : index
    %33 = vector.load %arg6[%c0_7, %c0_8, %c0_9] : memref<1x4x256xf32, #tpu.memory_space<vmem>>, vector<1x4x256xf32>
    %34 = vector.shape_cast %33 : vector<1x4x256xf32> to vector<4x256xf32>
    %35 = vector.shape_cast %32 : vector<4x256xf32> to vector<1x4x256xf32>
    tpu.vector_store %arg6[%c0_7, %c0_8, %c0_9], %35 {strides = array<i32>} : memref<1x4x256xf32, #tpu.memory_space<vmem>>, vector<1x4x256xf32>,
    return
  }
  func.func @transform_0(%arg0: i32, %arg1: i32) -> (i32, i32, i32) {
    %c0_i32 = arith.constant 0 : i32
    %c0_i32_0 = arith.constant 0 : i32
    return %arg0, %c0_i32, %arg1 : i32, i32, i32
  }
  func.func @transform_1(%arg0: i32, %arg1: i32) -> (i32, i32) {
    %c0_i32 = arith.constant 0 : i32
    %c0_i32_0 = arith.constant 0 : i32
    %c0_i32_1 = arith.constant 0 : i32
    return %c0_i32, %c0_i32_0 : i32, i32
  }
  func.func @transform_2(%arg0: i32, %arg1: i32) -> (i32, i32) {
    %c0_i32 = arith.constant 0 : i32
    %c0_i32_0 = arith.constant 0 : i32
    %c0_i32_1 = arith.constant 0 : i32
    return %c0_i32, %c0_i32_0 : i32, i32
  }
  func.func @transform_3(%arg0: i32, %arg1: i32) -> i32 {
    %c0_i32 = arith.constant 0 : i32
    %c0_i32_0 = arith.constant 0 : i32
    return %c0_i32 : i32
  }
  func.func @transform_4(%arg0: i32, %arg1: i32) -> (i32, i32, i32) {
    %c0_i32 = arith.constant 0 : i32
    %c0_i32_0 = arith.constant 0 : i32
    return %arg0, %c0_i32, %arg1 : i32, i32, i32
  }
}

</mosaic_0001>

<bundles_post_ra>
// kernel: tpu_custom_call.1
= control target key start
LH: loop header
LB: loop body
LE: loop exit
PB: predicated region body
PF: predicated region fallthrough
CT: control target
= control target key end

     0   :  { %s783_s0 = inlined_call_operand.hbm [shape: f32[2,4,256], index: 0, kind: input, shape index: {}]   ;;  %s784_s1 = inlined_call_operand.vmem [shape: f32[4,4], index: 1, kind: input, shape index: {}]   ;;  %s785_s2 = inlined_call_operand.vmem [shape: f32[4,1], index: 2, kind: input, shape index: {}]   ;;  %s786_s3 = inlined_call_operand.<no memory space> [shape: f32[1], index: 3, kind: input, shape index: {}]   ;;  %s787_s4 = inlined_call_operand.hbm [shape: f32[2,4,256], index: 4, kind: output, shape index: {}]  }
   0x1   :  { %9 = sst [smem:[#allocation2]] %s786_s3 }
   0x2   :  { %10 = vsyncpa [#allocation4], 0 }
   0x3   :  { %12 = vsyncpa [#allocation4 + $0x1], 0 }
   0x4   :  { %13 = vsyncpa [#allocation5], 0 }
   0x5   :  { %15 = vsyncpa [#allocation5 + $0x1], 0  ;;  %s653_s17 = smov 0   ;;  %s655_s18 = smov 0  }
   0x6   :  { %s657_s19 = smov 0   ;;  %s659_s20 = smov 0  }
   0x7   :  { %s661_s21 = smov 0   ;;  %s663_s22 = smov 0  }
   0x8 LB: > { %s418_s3 = sadd.s32 4294967295, %s619_s22   ;;  %s419_s23 = sadd.s32 4294967294, %s619_s22   ;;  %s619_s22 = sphi %s663_s22, %s21_s22   ;;  %s615_s21 = sphi %s661_s21, %s796_s21   ;;  %s611_s20 = sphi %s659_s20, %s795_s20   ;;  %s607_s19 = sphi %s657_s19, %s794_s19   ;;  %s603_s18 = sphi %s655_s18, %s793_s18   ;;  %s599_s17 = sphi %s653_s17, %s792_s17  }
   0x9   : > { %s33_s24 = sadd.s32 1, %s615_s21  ;;  %s42_s25 = sadd.s32 1, %s607_s19 }
   0xa   : > { %p35_p0 = scmp.ge.s32.totalorder %s33_s24, 2  ;;  %p49_p1 = scmp.ne.s32.totalorder %s607_s19, %s603_s18 }
   0xb   : > { %p50_p2 = scmp.eq.s32.totalorder %s619_s22, 0  ;;  %p55_p3 = scmp.ne.s32.totalorder %s603_s18, %s599_s17 }
   0xc   : > { %s798_s24 = smov (%p35_p0, %s33_s24), 0  ;;  %p56_p5 = scmp.eq.s32.totalorder %s418_s3, 0 }
   0xd   : > { %p694_p4 = por %p50_p2, %p49_p1  ;;  %s37_s27 = ssub.s32 %s615_s21, %s798_s24 }
   0xe   : > { %p144_p6 = scmp.eq.s32.totalorder %s418_s3, 1  ;;  %p40_p7 = scmp.eq.s32.totalorder %s37_s27, 0 }
   0xf   : > { %p700_p8 = por %p56_p5, %p55_p3  ;;  %p150_p10 = scmp.eq.s32.totalorder %s419_s23, 1 }
  0x10   : > { %p704_p9 = por %p144_p6, %p49_p1  ;;  %p421_p12 = scmp.ge.s32.totalorder %s619_s22, 2 }
  0x11   : > { %s709_s30 = scalar_select %p40_p7, %s607_s19, %s42_s25  }
  0x12   : > { %p711_p11 = por %p150_p10, %p55_p3  ;;  %p447_p13 = scmp.lt.s32.totalorder %s619_s22, 2 }
  0x13   : > { %s179_s6 = sand.u32 1, %s607_s19   ;;  %s433_s8 = sshll.u32 %s615_s21, 3 }
  0x14   : > { %s422_s7 = sshll.u32 %s179_s6, 3  ;;  %s190_s11 = scalar_lea.hbm %s783_s0, %s433_s8 }
  0x15   : > { %s183_s12 = scalar_lea.vmem [#allocation3], %s422_s7  ;;  %s192_s14 = sshll.u32 %s190_s11, 4  ;;  %s193_s14 = int_to_ptr.hbm [resolvable:$true] %s192_s14 }
  0x16   : > { %s194_s13 = sshll.u32 %s183_s12, 4  ;;  %p440_p0 = pnand %p447_p13, %p694_p4  ;;  %s195_s13 = int_to_ptr.vmem [resolvable:$true] %s194_s13 }
  0x17   : > { %p425_p1 = scmp.ge.s32.totalorder %s619_s22, 1  ;;  %p199_p2 = scmp.lt.s32.totalorder %s619_s22, 3 }
  0x18   : > { %s180_s15 = scalar_lea.sflag [#allocation4], %s179_s6 }
  0x19   : > { %442 = dma.hbm_to_vmem [thread:$0]  (!%p440_p0), %s193_s14, 128, %s195_s13, %s180_s15  }
  0x1a   : > { %p200_p3 = pnand %p425_p1, %p199_p2 }
  0x1b   : > { %s727_s16 = sand.u32 (!%p200_p3), 1, %s603_s18  }
  0x1c   : > { %203 = sbr.rel (%p200_p3) target bundleno = 180 (0xb4), region = 36  ;;  %s426_s3 = sshll.u32 (!%p200_p3), %s727_s16, 3 }
  0x1d   : > { %s206_s23 = scalar_lea.sflag (!%p200_p3), [#allocation4], %s727_s16  ;;  %s209_s25 = scalar_lea.vmem (!%p200_p3), [#allocation3], %s426_s3 }
  0x21   : > { %590 = dma.done.wait (%p700_p8), %s206_s23, 128  }
  0x22   : > { %592 = vsyncadd (%p700_p8), %s206_s23, 4294967168  ;;  %v621_v0 = vmov 0   ;;  %v622_v1 = vmov 2   ;;  %v238_v2 = vld [vmem:[%s784_s1] sm:$0xf]  ;;  %v623_v4 = vmov 1  }
  0x23   : > { %501 = vset.pattern.permute.xlu0 %v621_v0  ;;  %503 = vset.pattern.permute.xlu1 %v622_v1  ;;  %v295_v3 = vld [vmem:[%s785_s2] sm:$0xf]  ;;  %v624_v5 = vmov 3   ;;  %s303_s28 = sld [smem:[#allocation2]]  ;;  %s434_s8 = sshll.u32 %s611_s20, 3  ;;  %vm310_vm0 = vcmask 1043456  }
  0x24   : > { %505 = vset.pattern.permute.xlu2 %v621_v0  ;;  %241 = vperm.xlu0 %501, %v238_v2   ;;  %v237_v6 = vld [vmem:[%s209_s25] sm:$0xff]  ;;  %s329_s11 = scalar_lea.hbm %s787_s4, %s434_s8  ;;  %s234_s12 = scalar_lea.vmem [#allocation6], %s426_s3 }
  0x25   : > { %268 = vperm.xlu1 %503, %v238_v2   ;;  %298 = vperm.xlu2 %505, %v295_v3   ;;  %v245_v9 = vperm.slane %v237_v6, 0  ;;  %v246_v10 = vperm.slane %v237_v6, 4  ;;  %v257_v11 = vperm.slane %v237_v6, 1  ;;  %v258_v12 = vperm.slane %v237_v6, 5  ;;  %s331_s13 = sshll.u32 %s234_s12, 4  ;;  %s333_s14 = sshll.u32 %s329_s11, 4  ;;  %s332_s13 = int_to_ptr.vmem [resolvable:$true] %s331_s13  ;;  %s334_s14 = int_to_ptr.hbm [resolvable:$true] %s333_s14 }
  0x26   : > { %v271_v13 = vperm.slane %v237_v6, 2  ;;  %v272_v14 = vperm.slane %v237_v6, 6  ;;  %v285_v15 = vperm.slane %v237_v6, 3  ;;  %v286_v16 = vperm.slane %v237_v6, 7  ;;  %s316_s20 = scalar_lea.sflag [#allocation5], %s727_s16  ;;  %s551_s15 = sshra.s32 %s334_s14, 4  ;;  %s552_s15 = int_to_ptr.hbm [resolvable:$true] %s551_s15 }
  0x27   : > { %v249_v17 = vperm.slane %v245_v9, 0  ;;  %v250_v18 = vperm.slane %v246_v10, 0  ;;  %v261_v19 = vperm.slane %v257_v11, 1  ;;  %v262_v20 = vperm.slane %v258_v12, 1  ;;  %s553_s23 = scalar_lea.hbm %s552_s15, 8  ;;  %s557_s27 = scalar_lea.hbm %s787_s4, 16 }
  0x28   : > { %v275_v21 = vperm.slane %v271_v13, 2  ;;  %v276_v22 = vperm.slane %v272_v14, 2  ;;  %v289_v23 = vperm.slane %v285_v15, 3  ;;  %v290_v24 = vperm.slane %v286_v16, 3  ;;  %p554_p4 = scmp.ne.s32.totalorder %s552_s15, %s553_s23  ;;  %p558_p7 = scmp.lt.s32.totalorder %s552_s15, %s787_s4 }
  0x29   : > { %v304_v42 = vstv %s303_s28  ;;  %p559_p8 = scmp.lt.s32.totalorder %s557_s27, %s553_s23 }
  0x2a   : > { %p555_p5 = pnand %p554_p4, %p704_p9 }
  0x2b   : > { %p560_p10 = por %p559_p8, %p558_p7 }
  0x2c   : > { %502 = vset.pattern.permute.xlu0 %v623_v4  ;;  %p556_p6 = pneg %p555_p5 }
  0x2d   : > { %504 = vset.pattern.permute.xlu1 %v624_v5  ;;  %254 = vperm.xlu0 %502, %v238_v2  }
  0x2e   : > { %282 = vperm.xlu1 %504, %v238_v2   ;;  %p561_p13 = pnand %p560_p10, %p556_p6 }
  0x35   : > { %506 = vset.pattern.permute.xlu0 %v621_v0 }
  0x7f   : > { %v299_v39 = vpop.permute.xlu2 %298 }
  0x96   : > { %v242_v7 = vpop.permute.xlu0 %241 }
  0x97   : > { %v269_v8 = vpop.permute.xlu1 %268  ;;  %v251_v27 = vmul.f32 %v249_v17, %v242_v7  ;;  %v252_v28 = vmul.f32 %v250_v18, %v242_v7 }
  0x98   : > { %v277_v31 = vmul.f32 %v275_v21, %v269_v8  ;;  %v278_v32 = vmul.f32 %v276_v22, %v269_v8 }
  0x9f   : > { %v255_v25 = vpop.permute.xlu0 %254 }
  0xa0   : > { %v283_v26 = vpop.permute.xlu1 %282  ;;  %v263_v29 = vmul.f32 %v261_v19, %v255_v25  ;;  %v264_v30 = vmul.f32 %v262_v20, %v255_v25 }
  0xa1   : > { %v291_v35 = vmul.f32 %v289_v23, %v283_v26  ;;  %v292_v36 = vmul.f32 %v290_v24, %v283_v26 }
  0xa2   : > { %v265_v33 = vadd.f32 %v263_v29, %v251_v27  ;;  %v266_v34 = vadd.f32 %v264_v30, %v252_v28 }
  0xa4   : > { %v279_v37 = vadd.f32 %v277_v31, %v265_v33  ;;  %v280_v38 = vadd.f32 %v278_v32, %v266_v34 }
  0xa6   : > { %v293_v40 = vadd.f32 %v291_v35, %v279_v37  ;;  %v294_v41 = vadd.f32 %v292_v36, %v280_v38 }
  0xa8   : > { %v301_v43 = vadd.f32 %v299_v39, %v293_v40  ;;  %v302_v44 = vadd.f32 %v299_v39, %v294_v41 }
  0xaa   : > { %v306_v45 = vmul.f32 %v304_v42, %v302_v44  ;;  %v305_v46 = vmul.f32 %v304_v42, %v301_v43 }
  0xac   : > { %v309_v47 = vrot.slane %v306_v45, 4 }
  0xae   : > { %v311_v48 = vsel %vm310_vm0, %v305_v46, %v309_v47 }
  0xaf   : > { %v313_v49 = vadd.f32 %v311_v48, %v237_v6 }
  0xb1   : > { %314 = vst [vmem:[%s234_s12] sm:$0xff] %v313_v49 }
  0xb2   : > { %564 = shalt.err (!%p561_p13)
}
  0xb3   : > { %437 = dma.vmem_to_hbm [thread:$0]  (%p704_p9), %s332_s13, 128, %s334_s14, %s316_s20  }
  0xb4 PF: > { %s345_s16 = sand.u32 1, %s599_s17   ;;  %p444_p0 = pnand %p421_p12, %p711_p11 }
  0xb5   : > { %s346_s7 = scalar_lea.sflag [#allocation5], %s345_s16 }
  0xb6   : > { %p445_p1 = pneg %p444_p0 }
  0xb8   : > { %594 = dma.done.wait (%p445_p1), %s346_s7, 128  }
  0xb9   : > { %596 = vsyncadd (%p445_p1), %s346_s7, 4294967168  ;;  %s21_s22 = sadd.s32 1, %s619_s22   ;;  %s792_s17 = smov %s603_s18 }
  0xba   : > { %p18_p2 = scmp.ge.s32.totalorder %s21_s22, 4   ;;  %s793_s18 = smov %s607_s19 }
  0xbb   : > { %s794_s19 = smov %s709_s30  ;;  %s795_s20 = smov %s615_s21 }
  0xbc   : > { %s796_s21 = smov %s798_s24  ;;  %20 = sbr.rel (!%p18_p2) target bundleno = 8 (0x8), region = 81 }
  0xc1   :  { %352 = vsyncpa [#allocation4], 1 }
  0xc2   :  { %354 = vsyncpa [#allocation4 + $0x1], 1 }
  0xc3   :  { %355 = vsyncpa [#allocation5], 1 }
  0xc4   :  { %357 = vsyncpa [#allocation5 + $0x1], 1 }

</bundles_post_ra>
